<compile_context>
chip_gen: v6e
topology: v6e:2x2x1
jax: 0.10.0
libtpu: 0.0.40
codegen_flags: <defaults>
</compile_context>

<pallas_src>
import functools

import jax
import jax.numpy as jnp
from jax import lax
from jax.experimental import pallas as pl
from jax.experimental.pallas import tpu as pltpu

DIM_FEATURES = 10
H0 = 15
H1 = 25
OUT = 1
NEG_SLOPE = 0.01            # torch.nn.LeakyReLU default

DEFAULT_TILE_N = 16 * 1024  # batch rows per grid step (cap); multiple of 128
MIN_SPLIT_TILE = 1024       # don't split batches smaller than 2x this

# Approximate f32 VMEM bytes per batch row at steady state (lane/sublane padded):
#   x block (T,10)->(T,128): 512 B, double-buffered -> 1024
#   in-kernel relayout temp (16,T): 64 | h0 (16,T): 64 | h1 (32,T): 128
#   out (8,T) double-buffered: 64
_VMEM_BYTES_PER_ROW = 1024 + 64 + 64 + 128 + 64

# dot_general dimension numbers for A @ B^T (contract last dims of both).
_TRANS_B = (((1,), (1,)), ((), ()))


def _leaky_relu(x):
    # max(x, a*x) == LeakyReLU for 0 < a < 1 (mul + max = 2 VALU ops).
    return jnp.maximum(x, NEG_SLOPE * x)


def _round_up(a, b):
    return -(-a // b) * b


def decoder1_kernel(x_ref, w0_ref, b0_ref, w1_ref, b1_ref, w2_ref, b2_ref, o_ref):
    # x_ref: (TILE_N, DIM_FEATURES) row-major batch block (one contiguous HBM DMA).
    x = x_ref[...]

    # Layer 0 with the batch->lane relayout fused into the matmul:
    # (15,10) . (TILE_N,10)^T -> (15, TILE_N); batch rides the 128-lane axis.
    h = lax.dot_general(w0_ref[...], x, _TRANS_B,
                        preferred_element_type=jnp.float32) + b0_ref[...]
    h = _leaky_relu(h)

    # Layer 1: (25,15) @ (15,TILE_N) + (25,1)
    h = jnp.dot(w1_ref[...], h, preferred_element_type=jnp.float32) + b1_ref[...]
    h = _leaky_relu(h)

    # Layer 2 on the MXU: (1,25) @ (25,TILE_N) + (1,1) -> lane-dense (1, TILE_N).
    o = jnp.dot(w2_ref[...], h, preferred_element_type=jnp.float32) + b2_ref[...]
    o_ref[...] = o.astype(o_ref.dtype)


@functools.partial(jax.jit, static_argnames=("tile_n",))
def decoder1_forward(x, params, *, tile_n=DEFAULT_TILE_N):
    """x: (N, DIM_FEATURES) float32 -> (N, 1) float32."""
    w0, b0, w1, b1, w2, b2 = params
    n = x.shape[0]

    # Pad only to the 128-lane granule, then pick a tile that divides the
    # padded batch (bounded junk rows), capped for VMEM (v7x = 64 MiB/TC) and
    # with grid >= 2 (even) when there is enough batch for both TensorCores.
    n_128 = _round_up(n, 128)
    cap = max(128, _round_up(min(tile_n, n_128), 128))
    num_tiles = -(-n_128 // cap)
    if num_tiles == 1 and n_128 >= 2 * MIN_SPLIT_TILE:
        num_tiles = 2
    if num_tiles > 1 and num_tiles % 2:
        num_tiles += 1
    tile = _round_up(-(-n_128 // num_tiles), 128)
    n_pad = num_tiles * tile

    if n_pad != n:
        x = jnp.pad(x, ((0, n_pad - n), (0, 0)))

    vmem_limit = min(_VMEM_BYTES_PER_ROW * tile + (4 << 20), 128 << 20)

    const = lambda a: pl.BlockSpec(a.shape, lambda i: (0, 0))

    out = pl.pallas_call(
        decoder1_kernel,
        out_shape=jax.ShapeDtypeStruct((OUT, n_pad), jnp.float32),
        grid_spec=pltpu.PrefetchScalarGridSpec(
            num_scalar_prefetch=0,
            grid=(num_tiles,),
            in_specs=[
                pl.BlockSpec((tile, DIM_FEATURES), lambda i: (i, 0)),
                const(w0),   # (15, 10)
                const(b0),   # (15, 1)
                const(w1),   # (25, 15)
                const(b1),   # (25, 1)
                const(w2),   # (1, 25)
                const(b2),   # (1, 1)
            ],
            out_specs=pl.BlockSpec((OUT, tile), lambda i: (0, i)),
        ),
        compiler_params=pltpu.CompilerParams(
            dimension_semantics=("parallel",),
            vmem_limit_bytes=vmem_limit,
        ),
    )(x, w0, b0, w1, b1, w2, b2)

    # Lane-dense (1, n_pad) kernel output -> module's (N, 1); drop padded tail.
    return out[0, :n][:, None]


def init_params(key):
    """Deterministic init mimicking torch.nn.Linear (uniform +/- 1/sqrt(fan_in)).

    All weights kept in PyTorch's (out_features, in_features) layout, which is
    exactly what the feature-major kernel consumes. Biases are (out_features, 1).
    """
    ks = jax.random.split(key, 6)

    def linear(kw, kb, fan_in, fan_out):
        bound = 1.0 / float(fan_in) ** 0.5
        w = jax.random.uniform(kw, (fan_out, fan_in), jnp.float32, -bound, bound)
        b = jax.random.uniform(kb, (fan_out, 1), jnp.float32, -bound, bound)
        return w, b

    w0, b0 = linear(ks[0], ks[1], DIM_FEATURES, H0)
    w1, b1 = linear(ks[2], ks[3], H0, H1)
    w2, b2 = linear(ks[4], ks[5], H1, OUT)
    return (w0, b0, w1, b1, w2, b2)


def reference_forward(x, params):
    w0, b0, w1, b1, w2, b2 = params
    h = _leaky_relu(x @ w0.T + b0.T)
    h = _leaky_relu(h @ w1.T + b1.T)
    return h @ w2.T + b2.T


if __name__ == "__main__":
    key = jax.random.PRNGKey(0)
    k_x, k_p, k_x2 = jax.random.split(key, 3)
    params = init_params(k_p)

    # Small-batch check (single grid step, 128-row lane-granule padding).
    x_small = jax.random.normal(k_x, (8, DIM_FEATURES), jnp.float32)
    out_small = jax.block_until_ready(decoder1_forward(x_small, params))
    ref_small = reference_forward(x_small, params)
    assert out_small.shape == (8, OUT), out_small.shape
    assert jnp.allclose(out_small, ref_small, atol=1e-5, rtol=1e-5)

    # Multi-tile check (exercises padding + even "parallel" grid for megacore).
    x_big = jax.random.normal(k_x2, (2573, DIM_FEATURES), jnp.float32)
    out_big = jax.block_until_ready(decoder1_forward(x_big, params))
    ref_big = reference_forward(x_big, params)
    assert out_big.shape == (2573, OUT), out_big.shape
    assert jnp.allclose(out_big, ref_big, atol=1e-5, rtol=1e-5)

    print("KERNEL_OK")
</pallas_src>

<mosaic_0001>
module attributes {stable_mosaic.version = 11 : i64} {
  func.func @decoder1_kernel(%arg0: i32, %arg1: memref<128x10xf32, #tpu.memory_space<vmem>>, %arg2: memref<15x10xf32, #tpu.memory_space<vmem>>, %arg3: memref<15x1xf32, #tpu.memory_space<vmem>>, %arg4: memref<25x15xf32, #tpu.memory_space<vmem>>, %arg5: memref<25x1xf32, #tpu.memory_space<vmem>>, %arg6: memref<1x25xf32, #tpu.memory_space<vmem>>, %arg7: memref<1x1xf32, #tpu.memory_space<vmem>>, %arg8: memref<1x128xf32, #tpu.memory_space<vmem>>) attributes {dimension_semantics = [#tpu.dimension_semantics<parallel>], iteration_bounds = array<i64: 1>, scalar_prefetch = 0 : i64, scratch_operands = 0 : i64, tpu.core_type = #tpu.core_type<tc>, window_params = [{transform_indices = @transform_0, window_bounds = array<i64: 128, 10>}, {pipeline_mode = #tpu.pipeline_mode<synchronous>, transform_indices = @transform_1, window_bounds = array<i64: 15, 10>}, {pipeline_mode = #tpu.pipeline_mode<synchronous>, transform_indices = @transform_2, window_bounds = array<i64: 15, 1>}, {pipeline_mode = #tpu.pipeline_mode<synchronous>, transform_indices = @transform_3, window_bounds = array<i64: 25, 15>}, {pipeline_mode = #tpu.pipeline_mode<synchronous>, transform_indices = @transform_4, window_bounds = array<i64: 25, 1>}, {pipeline_mode = #tpu.pipeline_mode<synchronous>, transform_indices = @transform_5, window_bounds = array<i64: 1, 25>}, {pipeline_mode = #tpu.pipeline_mode<synchronous>, transform_indices = @transform_6, window_bounds = array<i64: 1, 1>}, {transform_indices = @transform_7, window_bounds = array<i64: 1, 128>}]} {
    %c0 = arith.constant 0 : index
    %c0_0 = arith.constant 0 : index
    %0 = vector.load %arg1[%c0, %c0_0] : memref<128x10xf32, #tpu.memory_space<vmem>>, vector<128x10xf32>
    %c0_1 = arith.constant 0 : index
    %c0_2 = arith.constant 0 : index
    %1 = vector.load %arg2[%c0_1, %c0_2] : memref<15x10xf32, #tpu.memory_space<vmem>>, vector<15x10xf32>
    %cst = arith.constant dense<0.000000e+00> : vector<15x128xf32>
    %2 = tpu.matmul %1, %0, %cst {dimension_numbers = #tpu.dot_dimension_numbers<[1], [1], [0], [0], [0, 0, 1, 0], [], []>} : vector<15x10xf32>, vector<128x10xf32>, vector<15x128xf32> -> vector<15x128xf32>
    %c0_3 = arith.constant 0 : index
    %c0_4 = arith.constant 0 : index
    %3 = vector.load %arg3[%c0_3, %c0_4] : memref<15x1xf32, #tpu.memory_space<vmem>>, vector<15x1xf32>
    %4 = vector.broadcast %3 : vector<15x1xf32> to vector<15x128xf32>
    %5 = arith.addf %2, %4 : vector<15x128xf32>
    %cst_5 = arith.constant 0.00999999977 : f32
    %6 = vector.broadcast %cst_5 : f32 to vector<15x128xf32>
    %7 = arith.mulf %6, %5 : vector<15x128xf32>
    %8 = arith.maximumf %5, %7 : vector<15x128xf32>
    %c0_6 = arith.constant 0 : index
    %c0_7 = arith.constant 0 : index
    %9 = vector.load %arg4[%c0_6, %c0_7] : memref<25x15xf32, #tpu.memory_space<vmem>>, vector<25x15xf32>
    %cst_8 = arith.constant dense<0.000000e+00> : vector<25x128xf32>
    %10 = tpu.matmul %9, %8, %cst_8 {dimension_numbers = #tpu.dot_dimension_numbers<[1], [0], [0], [1], [0, 0, 1, 1], [], []>} : vector<25x15xf32>, vector<15x128xf32>, vector<25x128xf32> -> vector<25x128xf32>
    %c0_9 = arith.constant 0 : index
    %c0_10 = arith.constant 0 : index
    %11 = vector.load %arg5[%c0_9, %c0_10] : memref<25x1xf32, #tpu.memory_space<vmem>>, vector<25x1xf32>
    %12 = vector.broadcast %11 : vector<25x1xf32> to vector<25x128xf32>
    %13 = arith.addf %10, %12 : vector<25x128xf32>
    %cst_11 = arith.constant 0.00999999977 : f32
    %14 = vector.broadcast %cst_11 : f32 to vector<25x128xf32>
    %15 = arith.mulf %14, %13 : vector<25x128xf32>
    %16 = arith.maximumf %13, %15 : vector<25x128xf32>
    %c0_12 = arith.constant 0 : index
    %c0_13 = arith.constant 0 : index
    %17 = vector.load %arg6[%c0_12, %c0_13] : memref<1x25xf32, #tpu.memory_space<vmem>>, vector<1x25xf32>
    %cst_14 = arith.constant dense<0.000000e+00> : vector<1x128xf32>
    %18 = tpu.matmul %17, %16, %cst_14 {dimension_numbers = #tpu.dot_dimension_numbers<[1], [0], [0], [1], [0, 0, 1, 1], [], []>} : vector<1x25xf32>, vector<25x128xf32>, vector<1x128xf32> -> vector<1x128xf32>
    %c0_15 = arith.constant 0 : index
    %c0_16 = arith.constant 0 : index
    %19 = vector.load %arg7[%c0_15, %c0_16] : memref<1x1xf32, #tpu.memory_space<vmem>>, vector<1x1xf32>
    %20 = vector.broadcast %19 : vector<1x1xf32> to vector<1x128xf32>
    %21 = arith.addf %18, %20 : vector<1x128xf32>
    %c0_17 = arith.constant 0 : index
    %c0_18 = arith.constant 0 : index
    %22 = vector.load %arg8[%c0_17, %c0_18] : memref<1x128xf32, #tpu.memory_space<vmem>>, vector<1x128xf32>
    tpu.vector_store %arg8[%c0_17, %c0_18], %21 {strides = array<i32>} : memref<1x128xf32, #tpu.memory_space<vmem>>, vector<1x128xf32>,
    return
  }
  func.func @transform_0(%arg0: i32) -> (i32, i32) {
    %c0_i32 = arith.constant 0 : i32
    %c0_i32_0 = arith.constant 0 : i32
    return %arg0, %c0_i32 : i32, i32
  }
  func.func @transform_1(%arg0: i32) -> (i32, i32) {
    %c0_i32 = arith.constant 0 : i32
    %c0_i32_0 = arith.constant 0 : i32
    %c0_i32_1 = arith.constant 0 : i32
    return %c0_i32, %c0_i32_0 : i32, i32
  }
  func.func @transform_2(%arg0: i32) -> (i32, i32) {
    %c0_i32 = arith.constant 0 : i32
    %c0_i32_0 = arith.constant 0 : i32
    %c0_i32_1 = arith.constant 0 : i32
    return %c0_i32, %c0_i32_0 : i32, i32
  }
  func.func @transform_3(%arg0: i32) -> (i32, i32) {
    %c0_i32 = arith.constant 0 : i32
    %c0_i32_0 = arith.constant 0 : i32
    %c0_i32_1 = arith.constant 0 : i32
    return %c0_i32, %c0_i32_0 : i32, i32
  }
  func.func @transform_4(%arg0: i32) -> (i32, i32) {
    %c0_i32 = arith.constant 0 : i32
    %c0_i32_0 = arith.constant 0 : i32
    %c0_i32_1 = arith.constant 0 : i32
    return %c0_i32, %c0_i32_0 : i32, i32
  }
  func.func @transform_5(%arg0: i32) -> (i32, i32) {
    %c0_i32 = arith.constant 0 : i32
    %c0_i32_0 = arith.constant 0 : i32
    %c0_i32_1 = arith.constant 0 : i32
    return %c0_i32, %c0_i32_0 : i32, i32
  }
  func.func @transform_6(%arg0: i32) -> (i32, i32) {
    %c0_i32 = arith.constant 0 : i32
    %c0_i32_0 = arith.constant 0 : i32
    %c0_i32_1 = arith.constant 0 : i32
    return %c0_i32, %c0_i32_0 : i32, i32
  }
  func.func @transform_7(%arg0: i32) -> (i32, i32) {
    %c0_i32 = arith.constant 0 : i32
    %c0_i32_0 = arith.constant 0 : i32
    return %c0_i32, %arg0 : i32, i32
  }
}

</mosaic_0001>

<bundles_post_ra>
// kernel: decoder1_forward.1
= control target key start
LH: loop header
LB: loop body
LE: loop exit
PB: predicated region body
PF: predicated region fallthrough
CT: control target
= control target key end

     0   :  { %vm58_vm0 = vcmask 80896   ;;  %v539_v2 = vmov 0   ;;  %vm220_vm1 = vcmask 121856   ;;  %vm233_vm2 = vcmask 1046528   ;;  %s713_s0 = inlined_call_operand.vmem [shape: f32[128,10], index: 0, kind: input, shape index: {}]   ;;  %s714_s6 = inlined_call_operand.<no memory space> [shape: f32[1,1], index: 6, kind: input, shape index: {}]   ;;  %s715_s1 = inlined_call_operand.vmem [shape: f32[15,10], index: 1, kind: input, shape index: {}]   ;;  %s716_s2 = inlined_call_operand.vmem [shape: f32[15,1], index: 2, kind: input, shape index: {}]   ;;  %s717_s4 = inlined_call_operand.vmem [shape: f32[25,1], index: 4, kind: input, shape index: {}]   ;;  %s718_s3 = inlined_call_operand.vmem [shape: f32[25,15], index: 3, kind: input, shape index: {}]   ;;  %s719_s5 = inlined_call_operand.vmem [shape: f32[1,25], index: 5, kind: input, shape index: {}]   ;;  %s720_s7 = inlined_call_operand.vmem [shape: f32[1,128], index: 7, kind: output, shape index: {}]  }
   0x1   :  { %v43_v0 = vld [vmem:[%s713_s0 + $0x78] sm:$0xff]  ;;  %v42_v1 = vld [vmem:[%s713_s0 + $0x70] sm:$0xff]  ;;  %537 = vset.pattern.permute.xlu0 %v539_v2  ;;  %v12_v3 = vstv %s714_s6  ;;  %538 = vset.pattern.permute.xlu1 %v539_v2  ;;  %v41_v4 = vld [vmem:[%s713_s0 + $0x68] sm:$0xff]  ;;  %v540_v41 = vmov 0.0   ;;  %vm541_vm3 = vmmov 0   ;;  %vm345_vm4 = vcmask 1040384  }
   0x2   :  { %478 = vmatprep.subr.msk.mxu0 %vm58_vm0, %v43_v0  ;;  %13 = vst [vmem:[#allocation2] sm:$0x1] %v12_v3  ;;  %v44_v5 = vld [vmem:[%s715_s1] sm:$0xff]  ;;  %v47_v6 = vld [vmem:[%s716_s2 + $0x8] sm:$0x7f]  ;;  %v39_v9 = vld [vmem:[%s713_s0 + $0x58] sm:$0xff]  ;;  %v337_v63 = vlaneseq }
   0x3   :  { %479 = vmatpush3.xpose.msk.msra.mxu0 %vm58_vm0, %v43_v0  ;;  %510 = vmatprep.mubr.msk.f32.mxu0 %vm58_vm0, %v44_v5  ;;  %v40_v7 = vld [vmem:[%s713_s0 + $0x60] sm:$0xff]  ;;  %v197_v10 = vld [vmem:[%s717_s4 + $0x8] sm:$0xff]  ;;  %v38_v11 = vld [vmem:[%s713_s0 + $0x50] sm:$0xff]  ;;  %vm341_vm5 = vcmask 203776  }
   0x4   :  { %480 = vmatprep.subr.msk.mxu0 %vm58_vm0, %v42_v1  ;;  %55 = vperm.xlu0 %537, %v47_v6   ;;  %v46_v8 = vld [vmem:[%s716_s2] sm:$0xff]  ;;  %v37_v13 = vld [vmem:[%s713_s0 + $0x48] sm:$0xff]  ;;  %v35_v15 = vld [vmem:[%s713_s0 + $0x38] sm:$0xff]  ;;  %v338_v0 = vshrl.u32 %v337_v63, 7 }
   0x5   :  { %v36_v14 = vld [vmem:[%s713_s0 + $0x40] sm:$0xff]  ;;  %v34_v16 = vld [vmem:[%s713_s0 + $0x30] sm:$0xff]  ;;  %v33_v17 = vld [vmem:[%s713_s0 + $0x28] sm:$0xff] }
   0x6   :  { %v32_v18 = vld [vmem:[%s713_s0 + $0x20] sm:$0xff]  ;;  %v31_v19 = vld [vmem:[%s713_s0 + $0x18] sm:$0xff]  ;;  %v30_v20 = vld [vmem:[%s713_s0 + $0x10] sm:$0xff] }
   0x7   :  { %481 = vmatpush3.xpose.msk.msra.mxu0 %vm58_vm0, %v42_v1  ;;  %v29_v21 = vld [vmem:[%s713_s0 + $0x8] sm:$0xff]  ;;  %v28_v22 = vld [vmem:[%s713_s0] sm:$0xff]  ;;  %v199_v25 = vld [vmem:[%s717_s4 + $0x18] sm:$0x1]  ;;  %v339_v1 = vsub.s32 0, %v338_v0 }
   0x8   :  { %482 = vmatprep.subr.msk.mxu0 %vm58_vm0, %v41_v4  ;;  %50 = vperm.xlu0 %537, %v46_v8   ;;  %v45_v23 = vld [vmem:[%s715_s1 + $0x8] sm:$0x7f]  ;;  %v192_v24 = vld [vmem:[%s718_s3] sm:$0xff]  ;;  %v198_v26 = vld [vmem:[%s717_s4 + $0x10] sm:$0xff] }
   0x9   :  { %v331_v12 = vld [vmem:[#allocation2] sm:$0x1]  ;;  %517 = vmatprep.mubr.msk.f32.mxu1 %vm220_vm1, %v192_v24  ;;  %217 = vperm.xlu1 %538, %v199_v25   ;;  %v193_v38 = vld [vmem:[%s718_s3 + $0x8] sm:$0xff]  ;;  %v194_v39 = vld [vmem:[%s718_s3 + $0x10] sm:$0xff] }
   0xa   :  { %v196_v27 = vld [vmem:[%s717_s4] sm:$0xff]  ;;  %v195_v40 = vld [vmem:[%s718_s3 + $0x18] sm:$0x1] }
   0xb   :  { %483 = vmatpush3.xpose.msk.msra.mxu0 %vm58_vm0, %v41_v4  ;;  %v330_v62 = vld [vmem:[%s719_s5] sm:$0x1] }
   0xc   :  { %484 = vmatprep.subr.msk.mxu0 %vm58_vm0, %v40_v7  ;;  %207 = vperm.xlu0 %537, %v197_v10  }
   0xd   :  { %212 = vperm.xlu1 %538, %v198_v26  }
   0xf   :  { %485 = vmatpush3.xpose.msk.msra.mxu0 %vm58_vm0, %v40_v7 }
  0x10   :  { %486 = vmatprep.subr.msk.mxu0 %vm58_vm0, %v39_v9  ;;  %334 = vperm.xlu0 %537, %v331_v12  }
  0x11   :  { %202 = vperm.xlu1 %538, %v196_v27  }
  0x13   :  { %487 = vmatpush3.xpose.msk.msra.mxu0 %vm58_vm0, %v39_v9 }
  0x14   :  { %488 = vmatprep.subr.msk.mxu0 %vm58_vm0, %v38_v11 }
  0x17   :  { %489 = vmatpush3.xpose.msk.msra.mxu0 %vm58_vm0, %v38_v11 }
  0x18   :  { %490 = vmatprep.subr.msk.mxu0 %vm58_vm0, %v37_v13 }
  0x1b   :  { %491 = vmatpush3.xpose.msk.msra.mxu0 %vm58_vm0, %v37_v13 }
  0x1c   :  { %492 = vmatprep.subr.msk.mxu0 %vm58_vm0, %v36_v14 }
  0x1f   :  { %493 = vmatpush3.xpose.msk.msra.mxu0 %vm58_vm0, %v36_v14 }
  0x20   :  { %494 = vmatprep.subr.msk.mxu0 %vm58_vm0, %v35_v15 }
  0x23   :  { %495 = vmatpush3.xpose.msk.msra.mxu0 %vm58_vm0, %v35_v15 }
  0x24   :  { %496 = vmatprep.subr.msk.mxu0 %vm58_vm0, %v34_v16 }
  0x27   :  { %497 = vmatpush3.xpose.msk.msra.mxu0 %vm58_vm0, %v34_v16 }
  0x28   :  { %498 = vmatprep.subr.msk.mxu0 %vm58_vm0, %v33_v17 }
  0x2b   :  { %499 = vmatpush3.xpose.msk.msra.mxu0 %vm58_vm0, %v33_v17 }
  0x2c   :  { %500 = vmatprep.subr.msk.mxu0 %vm58_vm0, %v32_v18 }
  0x2f   :  { %501 = vmatpush3.xpose.msk.msra.mxu0 %vm58_vm0, %v32_v18 }
  0x30   :  { %502 = vmatprep.subr.msk.mxu0 %vm58_vm0, %v31_v19 }
  0x33   :  { %503 = vmatpush3.xpose.msk.msra.mxu0 %vm58_vm0, %v31_v19 }
  0x34   :  { %504 = vmatprep.subr.msk.mxu0 %vm58_vm0, %v30_v20 }
  0x37   :  { %505 = vmatpush3.xpose.msk.msra.mxu0 %vm58_vm0, %v30_v20 }
  0x38   :  { %506 = vmatprep.subr.msk.mxu0 %vm58_vm0, %v29_v21 }
  0x3b   :  { %507 = vmatpush3.xpose.msk.msra.mxu0 %vm58_vm0, %v29_v21 }
  0x3c   :  { %508 = vmatprep.subr.msk.mxu0 %vm58_vm0, %v28_v22 }
  0x3f   :  { %509 = vmatpush3.xpose.msk.msra.mxu0 %vm58_vm0, %v28_v22 }
  0x42   :  { %511 = vmatmul.mubr.msk.f32.vlgmr.msra.gmra.mxu0 %vm58_vm0, %v45_v23 }
  0x7f   :  { %v56_v28 = vpop.permute.xlu0 %55 }
  0x83   :  { %v51_v31 = vpop.permute.xlu0 %50 }
  0x84   :  { %v218_v42 = vpop.permute.xlu1 %217 }
  0x87   :  { %v208_v46 = vpop.permute.xlu0 %207 }
  0x88   :  { %v213_v43 = vpop.permute.xlu1 %212 }
  0x8b   :  { %v335_v2 = vpop.permute.xlu0 %334 }
  0x8c   :  { %v203_v47 = vpop.permute.xlu1 %202  ;;  %v340_v3 = vrot.slane %v335_v2, %v339_v1 }
 0x102   :  { %v512_v29 = vpop.f32.mrf.mxu0 }
 0x103   :  { %v185_v30 = vadd.f32 %v512_v29, %v56_v28 }
 0x104   :  { %v179_v32 = vpop.f32.mrf.mxu0 }
 0x105   :  { %v189_v33 = vmul.f32 0.01, %v185_v30  ;;  %v180_v34 = vadd.f32 %v179_v32, %v51_v31 }
 0x107   :  { %v188_v35 = vmul.f32 0.01, %v180_v34  ;;  %v191_v36 = vmax.f32 %v185_v30, %v189_v33 }
 0x109   :  { %v190_v37 = vmax.f32 %v180_v34, %v188_v35  ;;  %513 = vmatprep.subr.msk.mxu1 %vm233_vm2, %v191_v36 }
 0x10a   :  { %514 = vmatpush3.msk.msra.mxu1 %vm233_vm2, %v191_v36 }
 0x10b   :  { %515 = vmatprep.subr.mxu1 %v190_v37 }
 0x10c   :  { %516 = vmatpush3.msra.mxu1 %v190_v37 }
 0x10d   :  { %518 = vmatmul.mubr.msk.f32.vlgmr.msra.gmra.mxu1 %vm220_vm1, %v193_v38  ;;  %523 = vmatprep.subr.mxu1 %v540_v41 }
 0x10e   :  { %520 = vmatprep.mubr.msk.f32.mxu1 %vm220_vm1, %v194_v39 }
 0x111   :  { %521 = vmatmul.mubr.msk.f32.gmra.mxu1 %vm220_vm1, %v195_v40 }
 0x112   :  { %531 = vmatprep.mubr.msk.f32.mxu1 %vm541_vm3, %v540_v41 }
 0x1cd   :  { %v519_v44 = vpop.f32.mrf.mxu1 }
 0x1ce   :  { %v309_v49 = vadd.f32 %v519_v44, %v208_v46 }
 0x1cf   :  { %v303_v45 = vpop.f32.mrf.mxu1 }
 0x1d0   :  { %v304_v52 = vadd.f32 %v303_v45, %v203_v47  ;;  %v323_v55 = vmul.f32 0.01, %v309_v49 }
 0x1d1   :  { %v522_v48 = vpop.f32.mrf.mxu1 }
 0x1d2   :  { %v319_v50 = vadd.f32 %v522_v48, %v218_v42  ;;  %v322_v58 = vmul.f32 0.01, %v304_v52  ;;  %v327_v60 = vmax.f32 %v309_v49, %v323_v55 }
 0x1d3   :  { %v313_v51 = vpop.f32.mrf.mxu1 }
 0x1d4   :  { %v325_v53 = vmul.f32 0.01, %v319_v50  ;;  %v314_v54 = vadd.f32 %v313_v51, %v213_v43  ;;  %v326_v61 = vmax.f32 %v304_v52, %v322_v58 }
 0x1d6   :  { %v329_v56 = vmax.f32 %v319_v50, %v325_v53  ;;  %v324_v57 = vmul.f32 0.01, %v314_v54 }
 0x1d8   :  { %v328_v59 = vmax.f32 %v314_v54, %v324_v57  ;;  %524 = vmatpush3.msk.msra.mxu1 %vm345_vm4, %v329_v56 }
 0x1d9   :  { %525 = vmatprep.subr.mxu1 %v540_v41 }
 0x1da   :  { %526 = vmatpush3.msra.mxu1 %v328_v59 }
 0x1db   :  { %527 = vmatprep.subr.mxu1 %v540_v41 }
 0x1dc   :  { %528 = vmatpush3.msra.mxu1 %v327_v60 }
 0x1dd   :  { %529 = vmatprep.subr.mxu1 %v540_v41 }
 0x1de   :  { %530 = vmatpush3.msra.mxu1 %v326_v61 }
 0x1df   :  { %532 = vmatmul.mubr.msk.f32.vlgmr.msra.gmra.mxu1 %vm341_vm5, %v330_v62 }
 0x29f   :  { %v415_v4 = vpop.f32.mrf.mxu1 }
 0x2a0   :  { %v416_v5 = vadd.f32 %v415_v4, %v340_v3 }
 0x2a1   :  { %v533_v6 = vpop.f32.mrf.mxu1 }
 0x2a2   :  { %419 = vst [vmem:[%s720_s7] sm:$0x1] %v416_v5 }

</bundles_post_ra>
